<compile_context>
chip_gen: v5e
topology: v5e:2x2
jax: 0.10.0
libtpu: 0.0.40
codegen_flags: <defaults>
</compile_context>

<pallas_src>
import jax
import jax.numpy as jnp
from jax import lax
from jax.experimental import pallas as pl
from jax.experimental.pallas import tpu as pltpu

N_LAYERS = 6
DIMS = [8, 128, 64, 32, 16, 8, 1]
PAD = 128          # lane width of the packed slabs
SLAB_ROWS = 256    # compact K-packed rows for layers 2..6 (bf16 tile aligned)
W_OFFS = (0, 128, 192, 224, 240)   # row offsets of W2, W3, W4, W5, W6^T
KS = (128, 64, 32, 16)             # contraction sizes for layers 2..5

# normalize_datas as an affine transform: x_norm = x * SCALE + SHIFT
SCALE = [1.0 / 32, 1.0 / 2048, 1.0 / 90, 1.0 / 5,
         1.0 / 240, 1.0 / 8640, 1.0 / 9999, 1.0 / 50]
SHIFT = [0.0, 0.0, 0.0, 0.0, 0.0, 0.0, 0.0, -2000.0 / 50.0]


def mlp_kernel(x_ref, w1_ref, w_ref, b_ref, o_ref):
    # x_ref: (tile_b, 8) f32      w1_ref: (8, 128) f32 (normalization folded in)
    # w_ref: (256, 128) bf16      b_ref: (6, 1, 128) f32      o_ref: (1, tile_b) f32

    # Layer 1 (8 -> 128), f32 operands (folded normalization needs f32 precision).
    h = jnp.dot(x_ref[...], w1_ref[...], preferred_element_type=jnp.float32)
    h = jnp.maximum(h + b_ref[0], 0.0)

    # Layers 2..5: bf16 MXU operands, f32 accumulate / bias / ReLU.
    # Slab rows/cols beyond the true fan-in/fan-out are zero, so K-slicing the
    # activations and using the 128-wide padded output stays exact (padded
    # activation lanes remain 0 through every layer).
    for li, (off, k) in enumerate(zip(W_OFFS[:4], KS)):
        w = w_ref[off:off + k, :]                              # (k, 128) bf16
        h = jnp.dot(h[:, :k].astype(jnp.bfloat16), w,
                    preferred_element_type=jnp.float32)
        h = jnp.maximum(h + b_ref[li + 1], 0.0)

    # Layer 6 (8 -> 1): W6^T lives in slab row 240 (rows 241:256 are zero), so an
    # rhs-transposed matmul (contract lane dims of both operands) emits the batch
    # along lanes -> lane-dense (1, tile_b) output row, no XLU transpose needed.
    w6t = w_ref[240:256, :]                                    # (16, 128) bf16
    y = lax.dot_general(w6t, h.astype(jnp.bfloat16),
                        dimension_numbers=(((1,), (1,)), ((), ())),
                        preferred_element_type=jnp.float32)    # (16, tile_b)
    b6 = b_ref[5][:, 0:1]                                      # (1, 1)
    o_ref[...] = jnp.clip(y[0:1, :] + b6, 0.0, 5.5)


def make_params(key):
    """Deterministic init matching nn.Linear default (U(-1/sqrt(fan_in), +1/sqrt(fan_in)))."""
    params = []
    for i in range(N_LAYERS):
        fan_in, fan_out = DIMS[i], DIMS[i + 1]
        key, kw, kb = jax.random.split(key, 3)
        bound = 1.0 / jnp.sqrt(float(fan_in))
        # stored as (in, out) so the forward can do x @ W
        w = jax.random.uniform(kw, (fan_in, fan_out), jnp.float32, -bound, bound)
        b = jax.random.uniform(kb, (1, fan_out), jnp.float32, -bound, bound)
        params.append((w, b))
    return params


def pack_params(params):
    """Fold normalization into layer 1 and pack the params (done once, off the hot path).

    Returns:
      w1   : (8, 128)   f32   folded layer-1 weight  (diag(scale) @ W1)
      wslab: (256, 128) bf16  K-compact rows for layers 2..6 (W6 stored transposed)
      bslab: (6, 1, 128) f32  zero-padded biases (layer-1 bias already folded)
    """
    scale = jnp.array(SCALE, jnp.float32)
    shift = jnp.array(SHIFT, jnp.float32)
    w1, b1 = params[0]
    w1f = w1 * scale[:, None]                 # diag(scale) @ W1
    b1f = b1 + (shift @ w1)[None, :]          # shift @ W1 + b1

    w_slab = jnp.zeros((SLAB_ROWS, PAD), jnp.float32)
    b_slab = jnp.zeros((N_LAYERS, 1, PAD), jnp.float32)
    b_slab = b_slab.at[0, 0, :].set(b1f[0])
    for li in range(1, 5):                    # W2..W5 stored as (in, out)
        w, b = params[li]
        off = W_OFFS[li - 1]
        w_slab = w_slab.at[off:off + w.shape[0], :w.shape[1]].set(w)
        b_slab = b_slab.at[li, 0, :b.shape[1]].set(b[0])
    w6, b6 = params[5]                        # (8, 1), (1, 1)
    w_slab = w_slab.at[W_OFFS[4], :w6.shape[0]].set(w6[:, 0])   # W6^T as one row
    b_slab = b_slab.at[5, 0, 0].set(b6[0, 0])
    return w1f, w_slab.astype(jnp.bfloat16), b_slab


def _choose_tile(batch, max_tile=4096):
    # Single tile for latency-sized batches (block dims equal to full array dims
    # are always legal).  For larger batches, at least 2 tiles so the "parallel"
    # batch axis can be sharded across v7x's two TensorCores; tiles are a
    # multiple of 128 rows so the lane-dense output store stays unmasked.
    if batch <= 256:
        return batch
    half = pl.cdiv(batch, 2)
    return min(max_tile, pl.cdiv(half, 128) * 128)


def model_forward(x, w1, w_slab, b_slab):
    batch = x.shape[0]
    tile_b = _choose_tile(batch)
    grid = (pl.cdiv(batch, tile_b),)
    # NOTE: if batch % tile_b != 0 the padded rows of the last input block are
    # undefined; that is safe here (no cross-row reductions, padded output
    # columns are never read back), keep it that way if this kernel is extended.

    out_row = pl.pallas_call(
        mlp_kernel,
        out_shape=jax.ShapeDtypeStruct((1, batch), jnp.float32),
        grid=grid,
        in_specs=[
            pl.BlockSpec((tile_b, DIMS[0]), lambda i: (i, 0)),
            # Constant block index -> params stay VMEM-resident across grid steps.
            pl.BlockSpec((DIMS[0], PAD), lambda i: (0, 0)),
            pl.BlockSpec((SLAB_ROWS, PAD), lambda i: (0, 0)),
            pl.BlockSpec((N_LAYERS, 1, PAD), lambda i: (0, 0, 0)),
        ],
        out_specs=pl.BlockSpec((1, tile_b), lambda i: (0, i)),
        compiler_params=pltpu.CompilerParams(
            dimension_semantics=("parallel",)),   # shard batch tiles across TCs (v7x)
    )(x, w1, w_slab, b_slab)
    return out_row.reshape(batch, 1)


def reference_forward(x, params):
    """Pure-JAX f32 reference (unfolded, unpacked) for sanity checking."""
    scale = jnp.array(SCALE, jnp.float32)
    shift = jnp.array(SHIFT, jnp.float32)
    h = x * scale + shift
    for i, (w, b) in enumerate(params):
        h = h @ w + b
        if i < 5:
            h = jnp.maximum(h, 0.0)
    return jnp.clip(h, 0.0, 5.5)


if __name__ == "__main__":
    key = jax.random.PRNGKey(0)
    kx, kp = jax.random.split(key)

    params = make_params(kp)
    w1, w_slab, b_slab = pack_params(params)

    base = jnp.array([16.0, 1024.0, 45.0, 2.5, 120.0, 4320.0, 5000.0, 2015.0],
                     dtype=jnp.float32)

    # B=8 exercises the single-tile latency path; B=512 exercises the 2-tile
    # (megacore-shardable) path with a 256-row, lane-dense output tile.
    for B in (8, 512):
        kx, kb = jax.random.split(kx)
        noise = jax.random.uniform(kb, (B, 8), jnp.float32, 0.5, 1.5)
        x = base[None, :] * noise

        out = jax.block_until_ready(model_forward(x, w1, w_slab, b_slab))
        ref = reference_forward(x, params)

        assert out.shape == (B, 1), out.shape
        # bf16 matmul operands (layers 2..6) -> compare against the f32 reference
        # with a relaxed tolerance (outputs are clipped to [0, 5.5]).
        assert jnp.allclose(out, ref, atol=5e-2, rtol=5e-2), (
            B, float(jnp.max(jnp.abs(out - ref))))

    print("KERNEL_OK")
</pallas_src>

<mosaic_0001>
module attributes {stable_mosaic.version = 11 : i64} {
  func.func @mlp_kernel(%arg0: i32, %arg1: memref<8x8xf32, #tpu.memory_space<vmem>>, %arg2: memref<8x128xf32, #tpu.memory_space<vmem>>, %arg3: memref<256x128xbf16, #tpu.memory_space<vmem>>, %arg4: memref<6x1x128xf32, #tpu.memory_space<vmem>>, %arg5: memref<1x8xf32, #tpu.memory_space<vmem>>) attributes {dimension_semantics = [#tpu.dimension_semantics<parallel>], iteration_bounds = array<i64: 1>, scalar_prefetch = 0 : i64, scratch_operands = 0 : i64, tpu.core_type = #tpu.core_type<tc>, window_params = [{transform_indices = @transform_0, window_bounds = array<i64: 8, 8>}, {pipeline_mode = #tpu.pipeline_mode<synchronous>, transform_indices = @transform_1, window_bounds = array<i64: 8, 128>}, {pipeline_mode = #tpu.pipeline_mode<synchronous>, transform_indices = @transform_2, window_bounds = array<i64: 256, 128>}, {pipeline_mode = #tpu.pipeline_mode<synchronous>, transform_indices = @transform_3, window_bounds = array<i64: 6, 1, 128>}, {transform_indices = @transform_4, window_bounds = array<i64: 1, 8>}]} {
    %c0 = arith.constant 0 : index
    %c0_0 = arith.constant 0 : index
    %0 = vector.load %arg1[%c0, %c0_0] : memref<8x8xf32, #tpu.memory_space<vmem>>, vector<8x8xf32>
    %c0_1 = arith.constant 0 : index
    %c0_2 = arith.constant 0 : index
    %1 = vector.load %arg2[%c0_1, %c0_2] : memref<8x128xf32, #tpu.memory_space<vmem>>, vector<8x128xf32>
    %cst = arith.constant dense<0.000000e+00> : vector<8x128xf32>
    %2 = tpu.matmul %0, %1, %cst {dimension_numbers = #tpu.dot_dimension_numbers<[1], [0], [0], [1], [0, 0, 1, 1], [], []>} : vector<8x8xf32>, vector<8x128xf32>, vector<8x128xf32> -> vector<8x128xf32>
    %c0_3 = arith.constant 0 : index
    %c0_4 = arith.constant 0 : index
    %c0_5 = arith.constant 0 : index
    %3 = vector.load %arg4[%c0_3, %c0_4, %c0_5] : memref<6x1x128xf32, #tpu.memory_space<vmem>>, vector<1x1x128xf32>
    %4 = vector.shape_cast %3 : vector<1x1x128xf32> to vector<1x128xf32>
    %5 = vector.broadcast %4 : vector<1x128xf32> to vector<8x128xf32>
    %6 = arith.addf %2, %5 : vector<8x128xf32>
    %cst_6 = arith.constant 0.000000e+00 : f32
    %7 = vector.broadcast %cst_6 : f32 to vector<8x128xf32>
    %8 = arith.maximumf %6, %7 : vector<8x128xf32>
    %c0_7 = arith.constant 0 : index
    %c0_8 = arith.constant 0 : index
    %9 = vector.load %arg3[%c0_7, %c0_8] : memref<256x128xbf16, #tpu.memory_space<vmem>>, vector<128x128xbf16>
    %10 = arith.truncf %8 : vector<8x128xf32> to vector<8x128xbf16>
    %cst_9 = arith.constant dense<0.000000e+00> : vector<8x128xf32>
    %11 = tpu.matmul %10, %9, %cst_9 {dimension_numbers = #tpu.dot_dimension_numbers<[1], [0], [0], [1], [0, 0, 1, 1], [], []>} : vector<8x128xbf16>, vector<128x128xbf16>, vector<8x128xf32> -> vector<8x128xf32>
    %c1 = arith.constant 1 : index
    %c0_10 = arith.constant 0 : index
    %c0_11 = arith.constant 0 : index
    %12 = vector.load %arg4[%c1, %c0_10, %c0_11] : memref<6x1x128xf32, #tpu.memory_space<vmem>>, vector<1x1x128xf32>
    %13 = vector.shape_cast %12 : vector<1x1x128xf32> to vector<1x128xf32>
    %14 = vector.broadcast %13 : vector<1x128xf32> to vector<8x128xf32>
    %15 = arith.addf %11, %14 : vector<8x128xf32>
    %cst_12 = arith.constant 0.000000e+00 : f32
    %16 = vector.broadcast %cst_12 : f32 to vector<8x128xf32>
    %17 = arith.maximumf %15, %16 : vector<8x128xf32>
    %c128 = arith.constant 128 : index
    %c0_13 = arith.constant 0 : index
    %18 = vector.load %arg3[%c128, %c0_13] : memref<256x128xbf16, #tpu.memory_space<vmem>>, vector<64x128xbf16>
    %19 = vector.extract_strided_slice %17 {offsets = [0, 0], sizes = [8, 64], strides = [1, 1]} : vector<8x128xf32> to vector<8x64xf32>
    %20 = arith.truncf %19 : vector<8x64xf32> to vector<8x64xbf16>
    %cst_14 = arith.constant dense<0.000000e+00> : vector<8x128xf32>
    %21 = tpu.matmul %20, %18, %cst_14 {dimension_numbers = #tpu.dot_dimension_numbers<[1], [0], [0], [1], [0, 0, 1, 1], [], []>} : vector<8x64xbf16>, vector<64x128xbf16>, vector<8x128xf32> -> vector<8x128xf32>
    %c2 = arith.constant 2 : index
    %c0_15 = arith.constant 0 : index
    %c0_16 = arith.constant 0 : index
    %22 = vector.load %arg4[%c2, %c0_15, %c0_16] : memref<6x1x128xf32, #tpu.memory_space<vmem>>, vector<1x1x128xf32>
    %23 = vector.shape_cast %22 : vector<1x1x128xf32> to vector<1x128xf32>
    %24 = vector.broadcast %23 : vector<1x128xf32> to vector<8x128xf32>
    %25 = arith.addf %21, %24 : vector<8x128xf32>
    %cst_17 = arith.constant 0.000000e+00 : f32
    %26 = vector.broadcast %cst_17 : f32 to vector<8x128xf32>
    %27 = arith.maximumf %25, %26 : vector<8x128xf32>
    %c192 = arith.constant 192 : index
    %c0_18 = arith.constant 0 : index
    %28 = vector.load %arg3[%c192, %c0_18] : memref<256x128xbf16, #tpu.memory_space<vmem>>, vector<32x128xbf16>
    %29 = vector.extract_strided_slice %27 {offsets = [0, 0], sizes = [8, 32], strides = [1, 1]} : vector<8x128xf32> to vector<8x32xf32>
    %30 = arith.truncf %29 : vector<8x32xf32> to vector<8x32xbf16>
    %cst_19 = arith.constant dense<0.000000e+00> : vector<8x128xf32>
    %31 = tpu.matmul %30, %28, %cst_19 {dimension_numbers = #tpu.dot_dimension_numbers<[1], [0], [0], [1], [0, 0, 1, 1], [], []>} : vector<8x32xbf16>, vector<32x128xbf16>, vector<8x128xf32> -> vector<8x128xf32>
    %c3 = arith.constant 3 : index
    %c0_20 = arith.constant 0 : index
    %c0_21 = arith.constant 0 : index
    %32 = vector.load %arg4[%c3, %c0_20, %c0_21] : memref<6x1x128xf32, #tpu.memory_space<vmem>>, vector<1x1x128xf32>
    %33 = vector.shape_cast %32 : vector<1x1x128xf32> to vector<1x128xf32>
    %34 = vector.broadcast %33 : vector<1x128xf32> to vector<8x128xf32>
    %35 = arith.addf %31, %34 : vector<8x128xf32>
    %cst_22 = arith.constant 0.000000e+00 : f32
    %36 = vector.broadcast %cst_22 : f32 to vector<8x128xf32>
    %37 = arith.maximumf %35, %36 : vector<8x128xf32>
    %c224 = arith.constant 224 : index
    %c0_23 = arith.constant 0 : index
    %38 = vector.load %arg3[%c224, %c0_23] : memref<256x128xbf16, #tpu.memory_space<vmem>>, vector<16x128xbf16>
    %39 = vector.extract_strided_slice %37 {offsets = [0, 0], sizes = [8, 16], strides = [1, 1]} : vector<8x128xf32> to vector<8x16xf32>
    %40 = arith.truncf %39 : vector<8x16xf32> to vector<8x16xbf16>
    %cst_24 = arith.constant dense<0.000000e+00> : vector<8x128xf32>
    %41 = tpu.matmul %40, %38, %cst_24 {dimension_numbers = #tpu.dot_dimension_numbers<[1], [0], [0], [1], [0, 0, 1, 1], [], []>} : vector<8x16xbf16>, vector<16x128xbf16>, vector<8x128xf32> -> vector<8x128xf32>
    %c4 = arith.constant 4 : index
    %c0_25 = arith.constant 0 : index
    %c0_26 = arith.constant 0 : index
    %42 = vector.load %arg4[%c4, %c0_25, %c0_26] : memref<6x1x128xf32, #tpu.memory_space<vmem>>, vector<1x1x128xf32>
    %43 = vector.shape_cast %42 : vector<1x1x128xf32> to vector<1x128xf32>
    %44 = vector.broadcast %43 : vector<1x128xf32> to vector<8x128xf32>
    %45 = arith.addf %41, %44 : vector<8x128xf32>
    %cst_27 = arith.constant 0.000000e+00 : f32
    %46 = vector.broadcast %cst_27 : f32 to vector<8x128xf32>
    %47 = arith.maximumf %45, %46 : vector<8x128xf32>
    %c240 = arith.constant 240 : index
    %c0_28 = arith.constant 0 : index
    %48 = vector.load %arg3[%c240, %c0_28] : memref<256x128xbf16, #tpu.memory_space<vmem>>, vector<16x128xbf16>
    %49 = arith.truncf %47 : vector<8x128xf32> to vector<8x128xbf16>
    %cst_29 = arith.constant dense<0.000000e+00> : vector<16x8xf32>
    %50 = tpu.matmul %48, %49, %cst_29 {dimension_numbers = #tpu.dot_dimension_numbers<[1], [1], [0], [0], [0, 0, 1, 0], [], []>} : vector<16x128xbf16>, vector<8x128xbf16>, vector<16x8xf32> -> vector<16x8xf32>
    %c5 = arith.constant 5 : index
    %c0_30 = arith.constant 0 : index
    %c0_31 = arith.constant 0 : index
    %51 = vector.load %arg4[%c5, %c0_30, %c0_31] : memref<6x1x128xf32, #tpu.memory_space<vmem>>, vector<1x1x128xf32>
    %52 = vector.shape_cast %51 : vector<1x1x128xf32> to vector<1x128xf32>
    %53 = vector.extract_strided_slice %52 {offsets = [0, 0], sizes = [1, 1], strides = [1, 1]} : vector<1x128xf32> to vector<1x1xf32>
    %54 = vector.extract_strided_slice %50 {offsets = [0, 0], sizes = [1, 8], strides = [1, 1]} : vector<16x8xf32> to vector<1x8xf32>
    %55 = vector.broadcast %53 : vector<1x1xf32> to vector<1x8xf32>
    %56 = arith.addf %54, %55 : vector<1x8xf32>
    %cst_32 = arith.constant 0.000000e+00 : f32
    %cst_33 = arith.constant 5.500000e+00 : f32
    %57 = vector.broadcast %cst_32 : f32 to vector<1x8xf32>
    %58 = arith.maximumf %57, %56 : vector<1x8xf32>
    %59 = vector.broadcast %cst_33 : f32 to vector<1x8xf32>
    %60 = arith.minimumf %59, %58 : vector<1x8xf32>
    %c0_34 = arith.constant 0 : index
    %c0_35 = arith.constant 0 : index
    %61 = vector.load %arg5[%c0_34, %c0_35] : memref<1x8xf32, #tpu.memory_space<vmem>>, vector<1x8xf32>
    tpu.vector_store %arg5[%c0_34, %c0_35], %60 {strides = array<i32>} : memref<1x8xf32, #tpu.memory_space<vmem>>, vector<1x8xf32>,
    return
  }
  func.func @transform_0(%arg0: i32) -> (i32, i32) {
    %c0_i32 = arith.constant 0 : i32
    %c0_i32_0 = arith.constant 0 : i32
    return %arg0, %c0_i32 : i32, i32
  }
  func.func @transform_1(%arg0: i32) -> (i32, i32) {
    %c0_i32 = arith.constant 0 : i32
    %c0_i32_0 = arith.constant 0 : i32
    %c0_i32_1 = arith.constant 0 : i32
    return %c0_i32, %c0_i32_0 : i32, i32
  }
  func.func @transform_2(%arg0: i32) -> (i32, i32) {
    %c0_i32 = arith.constant 0 : i32
    %c0_i32_0 = arith.constant 0 : i32
    %c0_i32_1 = arith.constant 0 : i32
    return %c0_i32, %c0_i32_0 : i32, i32
  }
  func.func @transform_3(%arg0: i32) -> (i32, i32, i32) {
    %c0_i32 = arith.constant 0 : i32
    %c0_i32_0 = arith.constant 0 : i32
    %c0_i32_1 = arith.constant 0 : i32
    %c0_i32_2 = arith.constant 0 : i32
    return %c0_i32, %c0_i32_0, %c0_i32_1 : i32, i32, i32
  }
  func.func @transform_4(%arg0: i32) -> (i32, i32) {
    %c0_i32 = arith.constant 0 : i32
    %c0_i32_0 = arith.constant 0 : i32
    return %c0_i32, %arg0 : i32, i32
  }
}

</mosaic_0001>

<bundles_post_ra>
// kernel: tpu_custom_call.1
= control target key start
LH: loop header
LB: loop body
LE: loop exit
PB: predicated region body
PF: predicated region fallthrough
CT: control target
= control target key end

     0   :  { %9 = vsyncpa [#allocation3], 0  ;;  %s653_s0 = inlined_call_operand.hbm [shape: f32[8,8], index: 0, kind: input, shape index: {}]   ;;  %s654_s1 = inlined_call_operand.hbm [shape: f32[8,128], index: 1, kind: input, shape index: {}]   ;;  %s655_s2 = inlined_call_operand.hbm [shape: bf16[256,128], index: 2, kind: input, shape index: {}]   ;;  %s656_s3 = inlined_call_operand.hbm [shape: f32[6,1,128], index: 3, kind: input, shape index: {}]   ;;  %s657_s4 = inlined_call_operand.hbm [shape: f32[1,8], index: 4, kind: output, shape index: {}]  }
   0x1   :  { %10 = vsyncpa [#allocation6], 0 }
   0x2   :  { %11 = vsyncpa [#allocation9], 0  ;;  %s29_s17 = sshll.u32 %s654_s1, 4  ;;  %s30_s17 = int_to_ptr.hbm [resolvable:$true] %s29_s17 }
   0x3   :  { %12 = vsyncpa [#allocation4], 0  ;;  %s603_s18 = smov [#allocation5]   ;;  %s18_s22 = sshll.u32 %s653_s0, 4  ;;  %s19_s22 = int_to_ptr.hbm [resolvable:$true] %s18_s22 }
   0x4   :  { %s31_s19 = sshll.u32 %s603_s18, 4  ;;  %s604_s23 = smov [#allocation2]   ;;  %s32_s19 = int_to_ptr.vmem [resolvable:$true] %s31_s19 }
   0x5   :  { %34 = dma.hbm_to_vmem [thread:$0]  %s30_s17, 128, %s32_s19, [#allocation6]  }
   0x6   :  { %s20_s24 = sshll.u32 %s604_s23, 4  ;;  %s39_s27 = sshll.u32 %s655_s2, 4  ;;  %s21_s24 = int_to_ptr.vmem [resolvable:$true] %s20_s24  ;;  %s40_s27 = int_to_ptr.hbm [resolvable:$true] %s39_s27 }
   0x7   :  { %23 = dma.hbm_to_vmem [thread:$0]  %s19_s22, 128, %s21_s24, [#allocation3]  }
   0x8   :  { %s605_s1 = smov [#allocation7]   ;;  %s52_s5 = sshll.u32 %s656_s3, 4  ;;  %s53_s5 = int_to_ptr.hbm [resolvable:$true] %s52_s5 }
   0x9   :  { %s41_s28 = sshll.u32 %s605_s1, 4  ;;  %s606_s6 = smov 64   ;;  %s42_s28 = int_to_ptr.vmem [resolvable:$true] %s41_s28 }
   0xa   :  { %s607_s0 = smov 4   ;;  %s608_s7 = smov [#allocation8]  }
   0xb   :  { %47 = dma.hbm_to_vmem [thread:$0]  %s40_s27, 2048, %s42_s28, [#allocation6], %s606_s6, %s606_s6, %s607_s0  }
   0xc   :  { %s54_s8 = sshll.u32 %s608_s7, 4  ;;  %s609_s9 = smov 16   ;;  %s55_s8 = int_to_ptr.vmem [resolvable:$true] %s54_s8 }
   0xd   :  { %s610_s10 = smov 1  }
   0xe   :  { %60 = dma.hbm_to_vmem [thread:$0]  %s53_s5, 96, %s55_s8, [#allocation9], %s609_s9, %s609_s9, %s610_s10  }
   0xf   :  { %595 = dma.done.wait [#allocation3], 128  }
  0x10   :  { %596 = vsyncadd [#allocation3], 4294967168 }
  0x11   :  { %597 = dma.done.wait [#allocation6], 2176  }
  0x12   :  { %598 = vsyncadd [#allocation6], 4294965120 }
  0x13   :  { %599 = dma.done.wait [#allocation9], 96  }
  0x14   :  { %600 = vsyncadd [#allocation9], 4294967200  ;;  %vm84_vm0 = vcmask 64512   ;;  %v79_v0 = vld [vmem:[#allocation5] sm:$0xff]  ;;  %v78_v1 = vld [vmem:[#allocation2] sm:$0xff]  ;;  %vm231_vm1 = vcmask 523264  }
  0x15   :  { %v450_v2 = vld [vmem:[#allocation7 + $0x38] sm:$0xff]  ;;  %103 = vmatpush.msra.mxu0 %v79_v0  ;;  %v449_v3 = vld [vmem:[#allocation7 + $0x30] sm:$0xff]  ;;  %v448_v4 = vld [vmem:[#allocation7 + $0x28] sm:$0xff]  ;;  %vm271_vm2 = vcmask 261120   ;;  %vm303_vm3 = vcmask 130048   ;;  %v611_v41 = vmov 0  }
  0x16   :  { %375 = vmatmul.msk.f32.vlgmr.msra.gmra.mxu0 %vm84_vm0, %v78_v1  ;;  %179 = vmatpush.bf16.msra.mxu1 %v450_v2  ;;  %v447_v5 = vld [vmem:[#allocation7 + $0x20] sm:$0xff]  ;;  %v446_v6 = vld [vmem:[#allocation7 + $0x18] sm:$0xff]  ;;  %v445_v7 = vld [vmem:[#allocation7 + $0x10] sm:$0xff]  ;;  %s612_s2 = smov [#allocation10]   ;;  %s363_s13 = sshll.u32 %s657_s4, 4  ;;  %vm354_vm4 = vcmask 57344   ;;  %s364_s13 = int_to_ptr.hbm [resolvable:$true] %s363_s13 }
  0x17   :  { %v444_v8 = vld [vmem:[#allocation7 + $0x8] sm:$0xff]  ;;  %v443_v9 = vld [vmem:[#allocation7] sm:$0xff]  ;;  %v454_v10 = vld [vmem:[#allocation7 + $0x58] sm:$0xff]  ;;  %469 = vset.pattern.permute.xlu0 %v611_v41  ;;  %s361_s3 = sshll.u32 %s612_s2, 4  ;;  %s362_s3 = int_to_ptr.vmem [resolvable:$true] %s361_s3 }
  0x18   :  { %239 = vmatpush.bf16.msra.mxu2 %v454_v10  ;;  %v453_v11 = vld [vmem:[#allocation7 + $0x50] sm:$0xff]  ;;  %v470_v12 = vld [vmem:[#allocation8] ss:$0 sm:$0xff]  ;;  %v452_v17 = vld [vmem:[#allocation7 + $0x48] sm:$0xff] }
  0x19   :  { %v451_v18 = vld [vmem:[#allocation7 + $0x40] sm:$0xff]  ;;  %v456_v25 = vld [vmem:[#allocation7 + $0x68] sm:$0xff]  ;;  %v457_v33 = vld [vmem:[#allocation7 + $0x70] sm:$0xff] }
  0x1a   :  { %180 = vmatpush.bf16.msra.mxu1 %v449_v3  ;;  %v471_v19 = vld [vmem:[#allocation8 + $0x1] ss:$0 sm:$0xff]  ;;  %281 = vmatpush.bf16.msra.mxu3 %v456_v25  ;;  %v472_v27 = vld [vmem:[#allocation8 + $0x2] ss:$0 sm:$0xff]  ;;  %v473_v34 = vld [vmem:[#allocation8 + $0x3] ss:$0 sm:$0xff] }
  0x1b   :  { %v455_v26 = vld [vmem:[#allocation7 + $0x60] sm:$0xff]  ;;  %314 = vmatpush.bf16.msrb.mxu0 %v457_v33  ;;  %v458_v48 = vld [vmem:[#allocation7 + $0x78] sm:$0xff] }
  0x1c   :  { %240 = vmatpush.bf16.msra.mxu2 %v453_v11  ;;  %v344_v40 = vld [vmem:[#allocation8 + $0x5] sm:$0x1]  ;;  %v474_v42 = vld [vmem:[#allocation8 + $0x4] ss:$0 sm:$0xff] }
  0x1d   :  { %347 = vperm.xlu0 %469, %v344_v40  }
  0x1e   :  { %181 = vmatpush.bf16.msra.mxu1 %v448_v4  ;;  %282 = vmatpush.bf16.msra.mxu3 %v455_v26 }
  0x20   :  { %241 = vmatpush.bf16.msra.mxu2 %v452_v17 }
  0x22   :  { %182 = vmatpush.bf16.msra.mxu1 %v447_v5 }
  0x24   :  { %242 = vmatpush.bf16.msra.mxu2 %v451_v18 }
  0x26   :  { %183 = vmatpush.bf16.msra.mxu1 %v446_v6 }
  0x2a   :  { %184 = vmatpush.bf16.msra.mxu1 %v445_v7 }
  0x2e   :  { %185 = vmatpush.bf16.msra.mxu1 %v444_v8 }
  0x32   :  { %186 = vmatpush.bf16.msra.mxu1 %v443_v9 }
  0x8f   :  { %v348_v49 = vpop.permute.xlu0 %347 }
  0x90   :  { %v350_v50 = vperm.slane %v348_v49, 0 }
  0x93   :  { %v105_v13 = vpop.f32.mrf.mxu0 }
  0x94   :  { %v106_v14 = vadd.f32 %v470_v12, %v105_v13 }
  0x96   :  { %v108_v15 = vmax.f32 %v106_v14, 0.0 }
  0x98   :  { %v125_v16 = vpack.c.bf16 %v108_v15, %v108_v15 }
  0x9a   :  { %187 = vmatmul.bf16.vlgmr.msra.gmra.mxu1 %v125_v16 }
 0x117   :  { %v188_v20 = vpop.f32.mrf.mxu1 }
 0x118   :  { %v189_v21 = vadd.f32 %v471_v19, %v188_v20 }
 0x11a   :  { %v192_v22 = vmax.f32 %v189_v21, 0.0 }
 0x11c   :  { %v201_v23 = vpack.c.bf16 %v192_v22, %v192_v22 }
 0x11e   :  { %424 = vmatmul.msk.bf16.vlgmr.msra.gmra.mxu2 %vm231_vm1, %v201_v23 }
 0x11f   :  { %v190_v24 = vpop.f32.mrf.mxu1 }
 0x1a1   :  { %v244_v28 = vpop.f32.mrf.mxu2 }
 0x1a2   :  { %v245_v29 = vadd.f32 %v472_v27, %v244_v28 }
 0x1a4   :  { %v248_v30 = vmax.f32 %v245_v29, 0.0 }
 0x1a6   :  { %v253_v31 = vpack.c.bf16 %v248_v30, %v248_v30 }
 0x1a8   :  { %433 = vmatmul.msk.bf16.vlgmr.msra.gmra.mxu3 %vm271_vm2, %v253_v31 }
 0x1a9   :  { %v246_v32 = vpop.f32.mrf.mxu2 }
 0x22b   :  { %v284_v35 = vpop.f32.mrf.mxu3 }
 0x22c   :  { %v285_v36 = vadd.f32 %v473_v34, %v284_v35 }
 0x22e   :  { %v288_v37 = vmax.f32 %v285_v36, 0.0 }
 0x230   :  { %v291_v38 = vpack.c.bf16 %v288_v37, %v288_v37 }
 0x232   :  { %438 = vmatmul.msk.bf16.vlgmr.msrb.gmra.mxu0 %vm303_vm3, %v291_v38 }
 0x233   :  { %v286_v39 = vpop.f32.mrf.mxu3 }
 0x2af   :  { %v316_v43 = vpop.f32.mrf.mxu0 }
 0x2b0   :  { %v317_v44 = vadd.f32 %v474_v42, %v316_v43 }
 0x2b2   :  { %v320_v45 = vmax.f32 %v317_v44, 0.0 }
 0x2b4   :  { %v323_v46 = vpack.c.bf16 %v320_v45, %v320_v45 }
 0x2b6   :  { %337 = vmatpush.bf16.xpose.msrb.mxu3 %v323_v46 }
 0x2b7   :  { %v318_v47 = vpop.f32.mrf.mxu0 }
 0x2bd   :  { %338 = vmatmul.bf16.vlgmr.msrb.gmra.mxu3 %v458_v48 }
 0x340   :  { %v339_v51 = vpop.f32.mrf.mxu3 }
 0x341   :  { %v351_v52 = vadd.f32 %v350_v50, %v339_v51 }
 0x343   :  { %v352_v53 = vmax.f32 %v351_v52, 0.0 }
 0x345   :  { %v353_v54 = vmin.f32 %v352_v53, 5.5 }
 0x347   :  { %355 = vst.msk [vmem:[#allocation10] sm:$0x1] %vm354_vm4, %v353_v54 }
 0x348   :  { %v341_v55 = vpop.f32.mrf.mxu3  ;;  %366 = dma.vmem_to_hbm [thread:$0]  %s362_s3, 16, %s364_s13, [#allocation4]  }
 0x349   :  { %601 = dma.done.wait [#allocation4], 16  }
 0x34a   :  { %602 = vsyncadd [#allocation4], 4294967280 }
 0x34b   :  { %371 = vsyncpa [#allocation3], 1 }
 0x34c   :  { %372 = vsyncpa [#allocation6], 1 }
 0x34d   :  { %373 = vsyncpa [#allocation9], 1 }
 0x34e   :  { %374 = vsyncpa [#allocation4], 1 }

</bundles_post_ra>
